<compile_context>
chip_gen: v7x
topology: tpu7x:2x2x1
jax: 0.10.0
libtpu: 0.0.40
codegen_flags: <defaults>
</compile_context>

<pallas_src>
import functools

import jax
import jax.numpy as jnp
from jax import lax
from jax.experimental import pallas as pl
from jax.experimental.pallas import tpu as pltpu

KH = KW = 4
BN_EPS = 1e-5
LRELU_SLOPE = 0.2


# ----------------------------- small helpers --------------------------------------


def _round_up(x, m):
    return ((x + m - 1) // m) * m


def _cdiv(a, b):
    return -(-a // b)


def _pad_dim(d):
    """Lane-dim padding policy: 128-align big dims, only 8-align small ones so a
    Cout=8 / Cin=4 layer doesn't pay 16x HBM inflation purely for lane density."""
    return _round_up(d, 128) if d >= 128 else _round_up(d, 8)


def _vmem_capacity_bytes():
    try:
        cap = int(pltpu.get_tpu_info().vmem_capacity_bytes)
        if cap > 0:
            return cap
    except Exception:
        pass
    return 64 * 1024 * 1024  # conservative default (v7x per-TensorCore VMEM)


def _snap_tile_m(tm, M):
    tm = min(tm, _round_up(M, 8))
    if tm >= 16:
        tm = (tm // 16) * 16          # keep bf16 sublane tiling friendly
    return max(8, (tm // 8) * 8)


def _pick_tile_m(M, K_dim, C_dim, budget_bytes):
    """Largest TM (<=2048, snapped) whose double-buffered pass-1 tiles fit the budget;
    weights counted double-buffered (conservative until Buffered(1) is used)."""
    fixed = 2 * K_dim * C_dim * 2                  # bf16 weights, 2 buffers
    per_row = 2 * 2 * (K_dim + C_dim)              # bf16 patches + bf16 y, 2 buffers each
    tm = (budget_bytes - fixed) // per_row if budget_bytes > fixed else 8
    tm = min(int(tm), 2048)
    # keep >= 2 grid steps when possible so the second TensorCore (v7x) gets work
    tm = min(tm, _round_up(_cdiv(M, 2), 8))
    return _snap_tile_m(tm, M)


def _fused_vmem_bytes(num_tiles, tm, K_dim, C_dim):
    y_scr = num_tiles * tm * C_dim * 4
    reduce_tmp = 3 * y_scr                          # finalize temporaries (conservative)
    patches = 2 * tm * K_dim * 2
    weights = 2 * K_dim * C_dim * 2
    out = 2 * tm * C_dim * 4
    return y_scr + reduce_tmp + patches + weights + out + 8 * C_dim * 4


def _im2col_nchw(x_padded, stride):
    """x_padded: [N, C, Hp, Wp] (already reflect-padded) -> [M, K], Ho, Wo."""
    N, C, Hp, Wp = x_padded.shape
    Ho = (Hp - KH) // stride + 1
    Wo = (Wp - KW) // stride + 1
    cols = []
    for i in range(KH):
        for j in range(KW):
            cols.append(
                x_padded[:, :, i:i + stride * Ho:stride, j:j + stride * Wo:stride])
    patches = jnp.stack(cols, axis=2).reshape(N, C, KH, KW, Ho, Wo)
    # -> [N, Ho, Wo, C, KH, KW] -> [M, K]; K order (C, KH, KW) matches the flattening of
    # the PyTorch weight [Cout, Cin, KH, KW] over its last 3 dims.
    patches = patches.transpose(0, 4, 5, 1, 2, 3).reshape(N * Ho * Wo, C * KH * KW)
    return patches, Ho, Wo


def _tile_sum_m2(y, valid_rows):
    """Masked per-tile sum and centered second moment (f32); padded rows excluded."""
    rows = lax.broadcasted_iota(jnp.int32, y.shape, 0)
    ok = rows < valid_rows
    s = jnp.sum(jnp.where(ok, y, 0.0), axis=0, keepdims=True)
    mean = s / valid_rows.astype(jnp.float32)
    d = jnp.where(ok, y - mean, 0.0)
    m2 = jnp.sum(d * d, axis=0, keepdims=True)
    return s, m2


# ----------------------------- Pallas kernels ------------------------------------


def _fused_kernel(p_ref, w_ref, gb_ref, o_ref, y_scr, ss_scr, *,
                  tile_m, num_tiles, m_total):
    """Fused path. grid=(2, num_tiles):
      phase 0: conv tile on the MXU (bf16 in, f32 acc) into the resident VMEM scratch.
      phase 1, step 0: finalize centered BN stats over the whole scratch and fold
        gamma/beta into scale/shift (kept in a tiny scratch).
      phase 1, every step: apply scale/shift + LeakyReLU and write the output tile."""
    phase = pl.program_id(0)
    i = pl.program_id(1)

    @pl.when(phase == 0)
    def _():
        y_scr[i] = jnp.dot(p_ref[...], w_ref[...],
                           preferred_element_type=jnp.float32)

    @pl.when((phase == 1) & (i == 0))
    def _():
        m_pad = num_tiles * tile_m
        yall = y_scr[...].reshape(m_pad, -1)
        mean = jnp.sum(yall, axis=0, keepdims=True) / m_total
        d = yall - mean
        # Rows >= m_total are exactly zero (zero-padded patch rows), so their
        # (0 - mean)^2 contribution is removed in closed form -> centered variance.
        m2 = jnp.sum(d * d, axis=0, keepdims=True) - (m_pad - m_total) * mean * mean
        var = jnp.maximum(m2 / m_total, 0.0)
        inv_std = lax.rsqrt(var + BN_EPS)
        scale = gb_ref[0:1, :] * inv_std
        ss_scr[0:1, :] = scale
        ss_scr[1:2, :] = gb_ref[1:2, :] - mean * scale

    @pl.when(phase == 1)
    def _():
        z = y_scr[i] * ss_scr[0:1, :] + ss_scr[1:2, :]
        o_ref[...] = jnp.where(z >= 0, z, LRELU_SLOPE * z).astype(o_ref.dtype)


def _conv_stats_kernel(p_ref, w_ref, y_ref, stats_ref, *, tile_m, m_total):
    """Two-pass path, pass 1: conv tile on the MXU (bf16 in, f32 acc), bf16 y writeback,
    masked per-tile sum + centered second moment (for the numerically-safe combine)."""
    i = pl.program_id(0)
    y = jnp.dot(p_ref[...], w_ref[...], preferred_element_type=jnp.float32)
    y_ref[...] = y.astype(y_ref.dtype)
    valid = jnp.minimum(tile_m, m_total - i * tile_m)
    s, m2 = _tile_sum_m2(y, valid)
    stats_ref[0:1, :] = s
    stats_ref[1:2, :] = m2


def _bn_act_kernel(y_ref, ss_ref, o_ref):
    """Two-pass path, pass 2: folded BN affine + LeakyReLU(0.2); output aliases y."""
    z = y_ref[...].astype(jnp.float32) * ss_ref[0:1, :] + ss_ref[1:2, :]
    o_ref[...] = jnp.where(z >= 0, z, LRELU_SLOPE * z).astype(o_ref.dtype)


# ----------------------------- wrapper --------------------------------------------


@functools.partial(jax.jit, static_argnames=("stride", "tile_m", "path"))
def cnn_block_forward(x, weight, gamma, beta, *, stride, tile_m=None, path="auto"):
    """x: [N, Cin, H, W] (NCHW, like PyTorch). weight: [Cout, Cin, 4, 4]."""
    N, Cin, H, W = x.shape
    Cout = weight.shape[0]

    # Reflect padding + im2col, done in bf16 so the (still XLA-side) patches intermediate
    # is materialized once, at half the bytes, already in the kernel layout.
    # TODO(synk): unfold the 4x4 window in-kernel to kill the im2col HBM amplification.
    x_padded = jnp.pad(x.astype(jnp.bfloat16), ((0, 0), (0, 0), (1, 1), (1, 1)),
                       mode="reflect")
    patches, Ho, Wo = _im2col_nchw(x_padded, stride)            # [M, K] bf16
    M, K = patches.shape

    K_dim = _pad_dim(K)
    C_dim = _pad_dim(Cout)

    w2 = weight.astype(jnp.bfloat16).reshape(Cout, -1).T        # [K, Cout]
    w2p = jnp.pad(w2, ((0, K_dim - K), (0, C_dim - Cout)))
    gb = jnp.stack([jnp.pad(gamma.astype(jnp.float32), (0, C_dim - Cout)),
                    jnp.pad(beta.astype(jnp.float32), (0, C_dim - Cout))])  # [2, C_dim]

    vmem_cap = _vmem_capacity_bytes()
    vmem_limit = int(min(vmem_cap * 3 // 4, 96 * 1024 * 1024))
    budget = vmem_limit // 2

    # ---- choose the path and tile size -------------------------------------------
    tm_fused = _snap_tile_m(tile_m if tile_m is not None else 512, M)
    nt_fused = _cdiv(M, tm_fused)
    use_fused = path == "fused" or (
        path == "auto"
        and _fused_vmem_bytes(nt_fused, tm_fused, K_dim, C_dim) <= budget)

    if use_fused:
        tm, num_tiles = tm_fused, nt_fused
    else:
        tm = (_snap_tile_m(tile_m, M) if tile_m is not None
              else _pick_tile_m(M, K_dim, C_dim, budget))
        num_tiles = _cdiv(M, tm)
    M_pad = num_tiles * tm

    patches_p = jnp.pad(patches, ((0, M_pad - M), (0, K_dim - K)))

    if use_fused:
        out2d = pl.pallas_call(
            functools.partial(_fused_kernel, tile_m=tm, num_tiles=num_tiles,
                              m_total=M),
            out_shape=jax.ShapeDtypeStruct((M_pad, C_dim), jnp.float32),
            grid=(2, num_tiles),
            in_specs=[
                pl.BlockSpec((tm, K_dim),
                             lambda p, i: (i * (1 - p) + (num_tiles - 1) * p, 0)),
                pl.BlockSpec((K_dim, C_dim), lambda p, i: (0, 0)),
                pl.BlockSpec((2, C_dim), lambda p, i: (0, 0)),
            ],
            out_specs=pl.BlockSpec((tm, C_dim), lambda p, i: (i * p, 0)),
            scratch_shapes=[pltpu.VMEM((num_tiles, tm, C_dim), jnp.float32),
                            pltpu.VMEM((2, C_dim), jnp.float32)],
            compiler_params=pltpu.CompilerParams(
                dimension_semantics=("arbitrary", "arbitrary"),
                vmem_limit_bytes=vmem_limit),
        )(patches_p, w2p, gb)
    else:
        cost1 = pl.CostEstimate(
            flops=2 * M_pad * K_dim * C_dim, transcendentals=0,
            bytes_accessed=(M_pad * K_dim * 2 + K_dim * C_dim * 2
                            + M_pad * C_dim * 2 + num_tiles * 2 * C_dim * 4))
        # ---- pass 1: conv matmul + masked per-tile centered partial stats ---------
        y_p, stats = pl.pallas_call(
            functools.partial(_conv_stats_kernel, tile_m=tm, m_total=M),
            out_shape=(jax.ShapeDtypeStruct((M_pad, C_dim), jnp.bfloat16),
                       jax.ShapeDtypeStruct((num_tiles, 2, C_dim), jnp.float32)),
            grid=(num_tiles,),
            in_specs=[pl.BlockSpec((tm, K_dim), lambda i: (i, 0)),
                      pl.BlockSpec((K_dim, C_dim), lambda i: (0, 0))],
            out_specs=(pl.BlockSpec((tm, C_dim), lambda i: (i, 0)),
                       pl.BlockSpec((None, 2, C_dim), lambda i: (i, 0, 0))),
            compiler_params=pltpu.CompilerParams(
                dimension_semantics=("parallel",), vmem_limit_bytes=vmem_limit),
            cost_estimate=cost1,
        )(patches_p, w2p)

        # ---- finalize BN stats: parallel (chunked) combine of centered moments ----
        counts = jnp.minimum(tm, M - jnp.arange(num_tiles) * tm).astype(jnp.float32)
        sums, m2s = stats[:, 0, :], stats[:, 1, :]
        mean = jnp.sum(sums, axis=0) / M
        tile_means = sums / counts[:, None]
        m2 = jnp.sum(m2s, axis=0) + jnp.sum(
            counts[:, None] * (tile_means - mean[None, :]) ** 2, axis=0)
        var = jnp.maximum(m2 / M, 0.0)
        inv_std = lax.rsqrt(var + BN_EPS)
        scale = gb[0] * inv_std
        shift = gb[1] - mean * scale
        ss = jnp.stack([scale, shift])                           # [2, C_dim]

        # ---- pass 2: normalize + LeakyReLU; bf16 output aliased onto y ------------
        out2d = pl.pallas_call(
            _bn_act_kernel,
            out_shape=jax.ShapeDtypeStruct((M_pad, C_dim), jnp.bfloat16),
            grid=(num_tiles,),
            in_specs=[pl.BlockSpec((tm, C_dim), lambda i: (i, 0)),
                      pl.BlockSpec((2, C_dim), lambda i: (0, 0))],
            out_specs=pl.BlockSpec((tm, C_dim), lambda i: (i, 0)),
            input_output_aliases={0: 0},
            compiler_params=pltpu.CompilerParams(
                dimension_semantics=("parallel",), vmem_limit_bytes=vmem_limit),
        )(y_p, ss)

    # [M, Cout] (NHWC-flat) -> NCHW f32 to preserve the PyTorch module's output layout.
    # (A fused consumer could take the [M, Cout] / NHWC form directly.)
    return (out2d[:M, :Cout].astype(jnp.float32)
            .reshape(N, Ho, Wo, Cout).transpose(0, 3, 1, 2))


# ----------------------------- reference & test -----------------------------------


def _reference(x, weight, gamma, beta, stride, quantize_bf16=False):
    """Pure-JAX reference (lax conv + batchnorm + leaky relu). With quantize_bf16=True
    the conv inputs are rounded to bf16 so the reference matches the kernel's
    bf16-operand / f32-accumulation matmul."""
    if quantize_bf16:
        x = x.astype(jnp.bfloat16).astype(jnp.float32)
        weight = weight.astype(jnp.bfloat16).astype(jnp.float32)
    xp = jnp.pad(x, ((0, 0), (0, 0), (1, 1), (1, 1)), mode="reflect")
    y = lax.conv_general_dilated(
        xp, weight, window_strides=(stride, stride), padding="VALID",
        dimension_numbers=("NCHW", "OIHW", "NCHW"))
    mean = jnp.mean(y, axis=(0, 2, 3), keepdims=True)
    var = jnp.mean((y - mean) ** 2, axis=(0, 2, 3), keepdims=True)
    z = (y - mean) * lax.rsqrt(var + BN_EPS)
    z = z * gamma.reshape(1, -1, 1, 1) + beta.reshape(1, -1, 1, 1)
    return jnp.where(z >= 0, z, LRELU_SLOPE * z)


if __name__ == "__main__":
    N, Cin, H, W = 2, 4, 16, 16
    Cout, stride = 8, 2

    key = jax.random.PRNGKey(0)
    kx, kw, kg, kb = jax.random.split(key, 4)
    x = jax.random.normal(kx, (N, Cin, H, W), dtype=jnp.float32)
    weight = 0.05 * jax.random.normal(kw, (Cout, Cin, KH, KW), dtype=jnp.float32)
    gamma = 1.0 + 0.1 * jax.random.normal(kg, (Cout,), dtype=jnp.float32)
    beta = 0.1 * jax.random.normal(kb, (Cout,), dtype=jnp.float32)

    ref_q = _reference(x, weight, gamma, beta, stride, quantize_bf16=True)
    ref_f = _reference(x, weight, gamma, beta, stride, quantize_bf16=False)

    # 1) default (auto -> fused, VMEM-resident y) path.
    out = jax.block_until_ready(cnn_block_forward(x, weight, gamma, beta, stride=stride))
    assert out.shape == (N, Cout, H // stride, W // stride), out.shape
    err = float(jnp.max(jnp.abs(out - ref_q)))
    assert jnp.allclose(out, ref_q, rtol=2e-3, atol=2e-3), err
    assert jnp.allclose(out, ref_f, rtol=5e-2, atol=5e-2), float(
        jnp.max(jnp.abs(out - ref_f)))

    # 2) fused path, multi-tile grid with zero-padded rows in the last tile.
    out2 = jax.block_until_ready(
        cnn_block_forward(x, weight, gamma, beta, stride=stride, tile_m=48, path="fused"))
    err2 = float(jnp.max(jnp.abs(out2 - ref_q)))
    assert jnp.allclose(out2, ref_q, rtol=2e-3, atol=2e-3), err2

    # 3) two-pass (large-layer) path: bf16 y intermediate + aliased bf16 output.
    out3 = jax.block_until_ready(
        cnn_block_forward(x, weight, gamma, beta, stride=stride, tile_m=48,
                          path="two_pass"))
    err3 = float(jnp.max(jnp.abs(out3 - ref_q)))
    assert jnp.allclose(out3, ref_q, rtol=2e-2, atol=3e-2), err3

    print("KERNEL_OK")
</pallas_src>

<mosaic_0001>
module attributes {stable_mosaic.version = 11 : i64} {
  func.func @_fused_kernel(%arg0: i32, %arg1: i32, %arg2: memref<128x64xbf16, #tpu.memory_space<vmem>>, %arg3: memref<64x8xbf16, #tpu.memory_space<vmem>>, %arg4: memref<2x8xf32, #tpu.memory_space<vmem>>, %arg5: memref<128x8xf32, #tpu.memory_space<vmem>>, %arg6: memref<1x128x8xf32, #tpu.memory_space<vmem>>, %arg7: memref<2x8xf32, #tpu.memory_space<vmem>>) attributes {dimension_semantics = [#tpu.dimension_semantics<arbitrary>, #tpu.dimension_semantics<arbitrary>], iteration_bounds = array<i64: 2, 1>, scalar_prefetch = 0 : i64, scratch_operands = 2 : i64, tpu.core_type = #tpu.core_type<tc>, window_params = [{transform_indices = @transform_0, window_bounds = array<i64: 128, 64>}, {pipeline_mode = #tpu.pipeline_mode<synchronous>, transform_indices = @transform_1, window_bounds = array<i64: 64, 8>}, {pipeline_mode = #tpu.pipeline_mode<synchronous>, transform_indices = @transform_2, window_bounds = array<i64: 2, 8>}, {transform_indices = @transform_3, window_bounds = array<i64: 128, 8>}]} {
    %c0_i32 = arith.constant 0 : i32
    %0 = arith.cmpi eq, %arg0, %c0_i32 : i32
    %1 = arith.extui %0 : i1 to i32
    %c0_i32_0 = arith.constant 0 : i32
    %2 = arith.cmpi ne, %1, %c0_i32_0 : i32
    scf.if %2 {
      %c0 = arith.constant 0 : index
      %c0_5 = arith.constant 0 : index
      %11 = vector.load %arg2[%c0, %c0_5] : memref<128x64xbf16, #tpu.memory_space<vmem>>, vector<128x64xbf16>
      %c0_6 = arith.constant 0 : index
      %c0_7 = arith.constant 0 : index
      %12 = vector.load %arg3[%c0_6, %c0_7] : memref<64x8xbf16, #tpu.memory_space<vmem>>, vector<64x8xbf16>
      %cst = arith.constant dense<0.000000e+00> : vector<128x8xf32>
      %13 = tpu.matmul %11, %12, %cst {dimension_numbers = #tpu.dot_dimension_numbers<[1], [0], [0], [1], [0, 0, 1, 1], [], []>} : vector<128x64xbf16>, vector<64x8xbf16>, vector<128x8xf32> -> vector<128x8xf32>
      %14 = arith.index_cast %arg1 : i32 to index
      %c0_8 = arith.constant 0 : index
      %c0_9 = arith.constant 0 : index
      %15 = vector.load %arg6[%14, %c0_8, %c0_9] : memref<1x128x8xf32, #tpu.memory_space<vmem>>, vector<1x128x8xf32>
      %16 = vector.shape_cast %15 : vector<1x128x8xf32> to vector<128x8xf32>
      %17 = vector.shape_cast %13 : vector<128x8xf32> to vector<1x128x8xf32>
      tpu.vector_store %arg6[%14, %c0_8, %c0_9], %17 {strides = array<i32>} : memref<1x128x8xf32, #tpu.memory_space<vmem>>, vector<1x128x8xf32>,
    } else {
    }
    %c1_i32 = arith.constant 1 : i32
    %3 = arith.cmpi eq, %arg0, %c1_i32 : i32
    %c0_i32_1 = arith.constant 0 : i32
    %4 = arith.cmpi eq, %arg1, %c0_i32_1 : i32
    %5 = arith.andi %3, %4 : i1
    %6 = arith.extui %5 : i1 to i32
    %c0_i32_2 = arith.constant 0 : i32
    %7 = arith.cmpi ne, %6, %c0_i32_2 : i32
    scf.if %7 {
      %c0 = arith.constant 0 : index
      %c0_5 = arith.constant 0 : index
      %c0_6 = arith.constant 0 : index
      %11 = vector.load %arg6[%c0, %c0_5, %c0_6] : memref<1x128x8xf32, #tpu.memory_space<vmem>>, vector<1x128x8xf32>
      %12 = vector.shape_cast %11 : vector<1x128x8xf32> to vector<128x8xf32>
      %cst = arith.constant dense<0.000000e+00> : vector<8xf32>
      %13 = vector.multi_reduction <add>, %12, %cst [0] : vector<128x8xf32> to vector<8xf32>
      %14 = vector.shape_cast %13 : vector<8xf32> to vector<1x8xf32>
      %cst_7 = arith.constant 1.280000e+02 : f32
      %15 = vector.broadcast %cst_7 : f32 to vector<1x8xf32>
      %16 = arith.divf %14, %15 : vector<1x8xf32>
      %17 = vector.broadcast %16 : vector<1x8xf32> to vector<128x8xf32>
      %18 = arith.subf %12, %17 : vector<128x8xf32>
      %19 = arith.mulf %18, %18 : vector<128x8xf32>
      %cst_8 = arith.constant dense<0.000000e+00> : vector<8xf32>
      %20 = vector.multi_reduction <add>, %19, %cst_8 [0] : vector<128x8xf32> to vector<8xf32>
      %21 = vector.shape_cast %20 : vector<8xf32> to vector<1x8xf32>
      %cst_9 = arith.constant 0.000000e+00 : f32
      %22 = vector.broadcast %cst_9 : f32 to vector<1x8xf32>
      %23 = arith.mulf %22, %16 : vector<1x8xf32>
      %24 = arith.mulf %23, %16 : vector<1x8xf32>
      %25 = arith.subf %21, %24 : vector<1x8xf32>
      %cst_10 = arith.constant 1.280000e+02 : f32
      %26 = vector.broadcast %cst_10 : f32 to vector<1x8xf32>
      %27 = arith.divf %25, %26 : vector<1x8xf32>
      %cst_11 = arith.constant 0.000000e+00 : f32
      %28 = vector.broadcast %cst_11 : f32 to vector<1x8xf32>
      %29 = arith.maximumf %27, %28 : vector<1x8xf32>
      %cst_12 = arith.constant 9.99999974E-6 : f32
      %30 = vector.broadcast %cst_12 : f32 to vector<1x8xf32>
      %31 = arith.addf %29, %30 : vector<1x8xf32>
      %32 = math.rsqrt %31 : vector<1x8xf32>
      %c0_13 = arith.constant 0 : index
      %c0_14 = arith.constant 0 : index
      %33 = vector.load %arg4[%c0_13, %c0_14] : memref<2x8xf32, #tpu.memory_space<vmem>>, vector<1x8xf32>
      %34 = arith.mulf %33, %32 : vector<1x8xf32>
      %c0_15 = arith.constant 0 : index
      %c0_16 = arith.constant 0 : index
      %35 = vector.load %arg7[%c0_15, %c0_16] : memref<2x8xf32, #tpu.memory_space<vmem>>, vector<1x8xf32>
      tpu.vector_store %arg7[%c0_15, %c0_16], %34 {strides = array<i32>} : memref<2x8xf32, #tpu.memory_space<vmem>>, vector<1x8xf32>,
      %c1 = arith.constant 1 : index
      %c0_17 = arith.constant 0 : index
      %36 = vector.load %arg4[%c1, %c0_17] : memref<2x8xf32, #tpu.memory_space<vmem>>, vector<1x8xf32>
      %37 = arith.mulf %16, %34 : vector<1x8xf32>
      %38 = arith.subf %36, %37 : vector<1x8xf32>
      %c1_18 = arith.constant 1 : index
      %c0_19 = arith.constant 0 : index
      %39 = vector.load %arg7[%c1_18, %c0_19] : memref<2x8xf32, #tpu.memory_space<vmem>>, vector<1x8xf32>
      tpu.vector_store %arg7[%c1_18, %c0_19], %38 {strides = array<i32>} : memref<2x8xf32, #tpu.memory_space<vmem>>, vector<1x8xf32>,
    } else {
    }
    %c1_i32_3 = arith.constant 1 : i32
    %8 = arith.cmpi eq, %arg0, %c1_i32_3 : i32
    %9 = arith.extui %8 : i1 to i32
    %c0_i32_4 = arith.constant 0 : i32
    %10 = arith.cmpi ne, %9, %c0_i32_4 : i32
    scf.if %10 {
      %11 = arith.index_cast %arg1 : i32 to index
      %c0 = arith.constant 0 : index
      %c0_5 = arith.constant 0 : index
      %12 = vector.load %arg6[%11, %c0, %c0_5] : memref<1x128x8xf32, #tpu.memory_space<vmem>>, vector<1x128x8xf32>
      %13 = vector.shape_cast %12 : vector<1x128x8xf32> to vector<128x8xf32>
      %c0_6 = arith.constant 0 : index
      %c0_7 = arith.constant 0 : index
      %14 = vector.load %arg7[%c0_6, %c0_7] : memref<2x8xf32, #tpu.memory_space<vmem>>, vector<1x8xf32>
      %15 = vector.broadcast %14 : vector<1x8xf32> to vector<128x8xf32>
      %16 = arith.mulf %13, %15 : vector<128x8xf32>
      %c1 = arith.constant 1 : index
      %c0_8 = arith.constant 0 : index
      %17 = vector.load %arg7[%c1, %c0_8] : memref<2x8xf32, #tpu.memory_space<vmem>>, vector<1x8xf32>
      %18 = vector.broadcast %17 : vector<1x8xf32> to vector<128x8xf32>
      %19 = arith.addf %16, %18 : vector<128x8xf32>
      %cst = arith.constant 0.000000e+00 : f32
      %20 = vector.broadcast %cst : f32 to vector<128x8xf32>
      %21 = arith.cmpf oge, %19, %20 : vector<128x8xf32>
      %cst_9 = arith.constant 2.000000e-01 : f32
      %22 = vector.broadcast %cst_9 : f32 to vector<128x8xf32>
      %23 = arith.mulf %22, %19 : vector<128x8xf32>
      %24 = arith.select %21, %19, %23 : vector<128x8xi1>, vector<128x8xf32>
      %c0_10 = arith.constant 0 : index
      %c0_11 = arith.constant 0 : index
      %25 = vector.load %arg5[%c0_10, %c0_11] : memref<128x8xf32, #tpu.memory_space<vmem>>, vector<128x8xf32>
      tpu.vector_store %arg5[%c0_10, %c0_11], %24 {strides = array<i32>} : memref<128x8xf32, #tpu.memory_space<vmem>>, vector<128x8xf32>,
    } else {
    }
    return
  }
  func.func @transform_0(%arg0: i32, %arg1: i32) -> (i32, i32) {
    %c1_i32 = arith.constant 1 : i32
    %0 = arith.subi %c1_i32, %arg0 : i32
    %1 = arith.muli %arg1, %0 : i32
    %c0_i32 = arith.constant 0 : i32
    %2 = arith.muli %c0_i32, %arg0 : i32
    %3 = arith.addi %1, %2 : i32
    %c0_i32_0 = arith.constant 0 : i32
    %c0_i32_1 = arith.constant 0 : i32
    return %3, %c0_i32_0 : i32, i32
  }
  func.func @transform_1(%arg0: i32, %arg1: i32) -> (i32, i32) {
    %c0_i32 = arith.constant 0 : i32
    %c0_i32_0 = arith.constant 0 : i32
    %c0_i32_1 = arith.constant 0 : i32
    return %c0_i32, %c0_i32_0 : i32, i32
  }
  func.func @transform_2(%arg0: i32, %arg1: i32) -> (i32, i32) {
    %c0_i32 = arith.constant 0 : i32
    %c0_i32_0 = arith.constant 0 : i32
    %c0_i32_1 = arith.constant 0 : i32
    return %c0_i32, %c0_i32_0 : i32, i32
  }
  func.func @transform_3(%arg0: i32, %arg1: i32) -> (i32, i32) {
    %0 = arith.muli %arg1, %arg0 : i32
    %c0_i32 = arith.constant 0 : i32
    %c0_i32_0 = arith.constant 0 : i32
    return %0, %c0_i32 : i32, i32
  }
}

</mosaic_0001>

<bundles_post_ra>
// kernel: cnn_block_forward.1
= control target key start
LH: loop header
LB: loop body
LE: loop exit
PB: predicated region body
PF: predicated region fallthrough
CT: control target
= control target key end

     0   :  { %s947_s12 = smov 0   ;;  %s949_s13 = smov 0   ;;  %s1199_s0 = inlined_call_operand.vmem [shape: bf16[128,64], index: 0, kind: input, shape index: {}]   ;;  %s1200_s1 = inlined_call_operand.vmem [shape: bf16[64,8], index: 1, kind: input, shape index: {}]   ;;  %s1201_s2 = inlined_call_operand.vmem [shape: f32[2,8], index: 2, kind: input, shape index: {}]   ;;  %s1202_s3 = inlined_call_operand.vmem [shape: f32[128,8], index: 3, kind: output, shape index: {}]  }
   0x1   :  { %s951_s14 = smov 0  }
   0x2 LB: > { %s25_s15 = sadd.s32 1, %s921_s13  ;;  %p790_p0 = scmp.ge.s32.totalorder %s925_s14, 1  ;;  %s925_s14 = sphi %s951_s14, %s13_s14   ;;  %s921_s13 = sphi %s949_s13, %s1204_s13   ;;  %s917_s12 = sphi %s947_s12, %s1203_s12  }
   0x3   : > { %p27_p1 = scmp.ge.s32.totalorder %s25_s15, 2  ;;  %p160_p2 = scmp.lt.s32.totalorder %s925_s14, 3 }
   0x5   : > { %s1206_s15 = smov (%p27_p1, %s25_s15), 0  ;;  %p161_p3 = pnand %p790_p0, %p160_p2 }
   0x6   : > { %p791_p4 = scmp.ne.s32.totalorder (!%p161_p3), %s917_s12, 0 }
   0x7   : > { %164 = sbr.rel (%p161_p3) target bundleno = 404 (0x194), region = 32 }
   0xe   : > { %209 = sbr.rel (%p791_p4) target bundleno = 255 (0xff), region = 36  ;;  %v889_v0 = vld [vmem:[%s1200_s1] sm:$0xff] (!%p791_p4)   ;;  %v890_v1 = vld [vmem:[%s1200_s1 + $0x8] sm:$0xff] (!%p791_p4)   ;;  %v891_v2 = vld [vmem:[%s1200_s1 + $0x10] sm:$0xff] (!%p791_p4)   ;;  %vm298_vm0 = vcmask (!%p791_p4), 523264   ;;  %vm422_vm1 = vcmask (!%p791_p4), 64512  }
   0xf   : > { %833 = vmatprep.subr.bf16.mxu0 (!%p791_p4), %v889_v0  ;;  %857 = vmatprep.subr.bf16.mxu1 (!%p791_p4), %v889_v0  ;;  %v893_v3 = vld [vmem:[%s1199_s0] sm:$0xff] (!%p791_p4)   ;;  %v892_v5 = vld [vmem:[%s1200_s1 + $0x18] sm:$0xff] (!%p791_p4)   ;;  %v895_v6 = vld [vmem:[%s1199_s0 + $0x8] sm:$0xff] (!%p791_p4)  }
  0x10   : > { %834 = vmatpush3.bf16.msra.mxu0 (!%p791_p4), %v889_v0  ;;  %861 = vmatpush3.bf16.msra.mxu1 (!%p791_p4), %v889_v0  ;;  %v894_v4 = vld [vmem:[%s1199_s0 + $0x20] sm:$0xff] (!%p791_p4)   ;;  %v896_v7 = vld [vmem:[%s1199_s0 + $0x28] sm:$0xff] (!%p791_p4)   ;;  %v897_v8 = vld [vmem:[%s1199_s0 + $0x10] sm:$0xff] (!%p791_p4)  }
  0x11   : > { %835 = vmatprep.subr.bf16.mxu0 (!%p791_p4), %v890_v1  ;;  %858 = vmatprep.subr.bf16.mxu1 (!%p791_p4), %v890_v1  ;;  %v898_v9 = vld [vmem:[%s1199_s0 + $0x30] sm:$0xff] (!%p791_p4)   ;;  %v899_v10 = vld [vmem:[%s1199_s0 + $0x18] sm:$0xff] (!%p791_p4)  }
  0x12   : > { %841 = vmatprep.mubr.msk.bf16.mxu0 (!%p791_p4), %vm298_vm0, %v893_v3  ;;  %849 = vmatprep.mubr.msk.bf16.mxu1 (!%p791_p4), %vm298_vm0, %v894_v4  ;;  %v900_v11 = vld [vmem:[%s1199_s0 + $0x38] sm:$0xff] (!%p791_p4)  }
  0x14   : > { %836 = vmatpush3.bf16.msra.mxu0 (!%p791_p4), %v890_v1  ;;  %862 = vmatpush3.bf16.msra.mxu1 (!%p791_p4), %v890_v1 }
  0x15   : > { %837 = vmatprep.subr.bf16.mxu0 %v891_v2  ;;  %859 = vmatprep.subr.bf16.mxu1 %v891_v2 }
  0x18   : > { %838 = vmatpush3.bf16.msra.mxu0 %v891_v2  ;;  %863 = vmatpush3.bf16.msra.mxu1 %v891_v2 }
  0x19   : > { %839 = vmatprep.subr.bf16.mxu0 %v892_v5  ;;  %860 = vmatprep.subr.bf16.mxu1 %v892_v5 }
  0x1c   : > { %840 = vmatpush3.bf16.msra.mxu0 %v892_v5  ;;  %864 = vmatpush3.bf16.msra.mxu1 %v892_v5 }
  0x1f   : > { %842 = vmatmul.mubr.msk.bf16.vlgmr.msra.gmra.mrb[0].mxu0 %vm298_vm0, %v895_v6  ;;  %850 = vmatmul.mubr.msk.bf16.vlgmr.msra.gmra.mrb[0].mxu1 %vm298_vm0, %v896_v7 }
  0x20   : > { %845 = vmatprep.mubr.msk.bf16.mxu0 %vm298_vm0, %v897_v8  ;;  %853 = vmatprep.mubr.msk.bf16.mxu1 %vm298_vm0, %v898_v9 }
  0x27   : > { %846 = vmatmul.mubr.msk.bf16.gmra.mrb[4].mxu0 %vm298_vm0, %v899_v10  ;;  %854 = vmatmul.mubr.msk.bf16.gmra.mrb[4].mxu1 %vm298_vm0, %v900_v11 }
  0xf2   : > { %v843_v12 = vpop.f32.mrb[0].mxu0  ;;  %v851_v13 = vpop.f32.mrb[0].mxu1 }
  0xf3   : > { %425 = vst.msk [vmem:[#allocation2 + $0x10] sm:$0xff] %vm422_vm1, %v843_v12  ;;  %433 = vst.msk [vmem:[#allocation2 + $0x50] sm:$0xff] %vm422_vm1, %v851_v13  ;;  %v357_v14 = vpop.f32.mrb[1].mxu0  ;;  %v389_v15 = vpop.f32.mrb[1].mxu1 }
  0xf4   : > { %423 = vst.msk [vmem:[#allocation2] sm:$0xff] %vm422_vm1, %v357_v14  ;;  %431 = vst.msk [vmem:[#allocation2 + $0x40] sm:$0xff] %vm422_vm1, %v389_v15  ;;  %v844_v16 = vpop.f32.mrb[2].mxu0  ;;  %v852_v17 = vpop.f32.mrb[2].mxu1 }
  0xf5   : > { %426 = vst.msk [vmem:[#allocation2 + $0x18] sm:$0xff] %vm422_vm1, %v844_v16  ;;  %434 = vst.msk [vmem:[#allocation2 + $0x58] sm:$0xff] %vm422_vm1, %v852_v17  ;;  %v360_v18 = vpop.f32.mrb[3].mxu0  ;;  %v392_v19 = vpop.f32.mrb[3].mxu1 }
  0xf6   : > { %424 = vst.msk [vmem:[#allocation2 + $0x8] sm:$0xff] %vm422_vm1, %v360_v18  ;;  %432 = vst.msk [vmem:[#allocation2 + $0x48] sm:$0xff] %vm422_vm1, %v392_v19 }
  0xfa   : > { %v847_v20 = vpop.f32.mrb[4].mxu0  ;;  %v855_v21 = vpop.f32.mrb[4].mxu1 }
  0xfb   : > { %429 = vst.msk [vmem:[#allocation2 + $0x30] sm:$0xff] %vm422_vm1, %v847_v20  ;;  %437 = vst.msk [vmem:[#allocation2 + $0x70] sm:$0xff] %vm422_vm1, %v855_v21  ;;  %v373_v22 = vpop.f32.mrb[5].mxu0  ;;  %v405_v23 = vpop.f32.mrb[5].mxu1 }
  0xfc   : > { %427 = vst.msk [vmem:[#allocation2 + $0x20] sm:$0xff] %vm422_vm1, %v373_v22  ;;  %435 = vst.msk [vmem:[#allocation2 + $0x60] sm:$0xff] %vm422_vm1, %v405_v23  ;;  %v848_v24 = vpop.f32.mrb[6].mxu0  ;;  %v856_v25 = vpop.f32.mrb[6].mxu1 }
  0xfd   : > { %430 = vst.msk [vmem:[#allocation2 + $0x38] sm:$0xff] %vm422_vm1, %v848_v24  ;;  %438 = vst.msk [vmem:[#allocation2 + $0x78] sm:$0xff] %vm422_vm1, %v856_v25  ;;  %v376_v26 = vpop.f32.mrb[7].mxu0  ;;  %v408_v27 = vpop.f32.mrb[7].mxu1 }
  0xfe   : > { %428 = vst.msk [vmem:[#allocation2 + $0x28] sm:$0xff] %vm422_vm1, %v376_v26  ;;  %436 = vst.msk [vmem:[#allocation2 + $0x68] sm:$0xff] %vm422_vm1, %v408_v27 }
  0xff PF: > { %p439_p5 = scmp.eq.s32.totalorder %s917_s12, 1 }
 0x100   : > { %v445_v28 = vld [vmem:[#allocation2] sm:$0xff] (%p439_p5)  ;;  %v446_v29 = vld [vmem:[#allocation2 + $0x8] sm:$0xff] (%p439_p5)  ;;  %v447_v30 = vld [vmem:[#allocation2 + $0x10] sm:$0xff] (%p439_p5)  ;;  %vm461_vm2 = vcmask (%p439_p5), 64512   ;;  %vm579_vm3 = vcmask (%p439_p5), 57344  }
 0x101   : > { %444 = sbr.rel (!%p439_p5) target bundleno = 375 (0x177), region = 40  ;;  %v448_v31 = vld [vmem:[#allocation2 + $0x18] sm:$0xff] (%p439_p5)  ;;  %v462_v32 = vsel (%p439_p5), %vm461_vm2, %v445_v28, 0.0  ;;  %v463_v33 = vsel (%p439_p5), %vm461_vm2, %v446_v29, 0.0  ;;  %v465_v34 = vsel (%p439_p5), %vm461_vm2, %v447_v30, 0.0  ;;  %v453_v47 = vld [vmem:[#allocation2 + $0x40] sm:$0xff] (%p439_p5) }
 0x102   : > { %v464_v36 = vadd.f32 (%p439_p5), %v463_v33, %v462_v32  ;;  %v467_v37 = vsel (%p439_p5), %vm461_vm2, %v448_v31, 0.0  ;;  %v451_v41 = vld [vmem:[#allocation2 + $0x30] sm:$0xff] (%p439_p5)  ;;  %v454_v50 = vld [vmem:[#allocation2 + $0x48] sm:$0xff] (%p439_p5)  ;;  %v477_v52 = vsel (%p439_p5), %vm461_vm2, %v453_v47, 0.0  ;;  %v456_v56 = vld [vmem:[#allocation2 + $0x58] sm:$0xff] (%p439_p5) }
 0x103   : > { %v449_v35 = vld [vmem:[#allocation2 + $0x20] sm:$0xff] (%p439_p5)  ;;  %v473_v46 = vsel (%p439_p5), %vm461_vm2, %v451_v41, 0.0  ;;  %v455_v53 = vld [vmem:[#allocation2 + $0x50] sm:$0xff] (%p439_p5)  ;;  %v479_v55 = vsel (%p439_p5), %vm461_vm2, %v454_v50, 0.0  ;;  %v483_v61 = vsel (%p439_p5), %vm461_vm2, %v456_v56, 0.0 }
 0x104   : > { %v466_v39 = vadd.f32 (%p439_p5), %v465_v34, %v464_v36  ;;  %v469_v40 = vsel (%p439_p5), %vm461_vm2, %v449_v35, 0.0  ;;  %v452_v44 = vld [vmem:[#allocation2 + $0x38] sm:$0xff] (%p439_p5)  ;;  %v481_v58 = vsel (%p439_p5), %vm461_vm2, %v455_v53, 0.0  ;;  %v457_v59 = vld [vmem:[#allocation2 + $0x60] sm:$0xff] (%p439_p5)  ;;  %v459_v1 = vld [vmem:[#allocation2 + $0x70] sm:$0xff] (%p439_p5) }
 0x105   : > { %v450_v38 = vld [vmem:[#allocation2 + $0x28] sm:$0xff] (%p439_p5)  ;;  %v475_v49 = vsel (%p439_p5), %vm461_vm2, %v452_v44, 0.0  ;;  %v485_v0 = vsel (%p439_p5), %vm461_vm2, %v457_v59, 0.0  ;;  %v460_v4 = vld [vmem:[#allocation2 + $0x78] sm:$0xff] (%p439_p5)  ;;  %v489_v6 = vsel (%p439_p5), %vm461_vm2, %v459_v1, 0.0 }
 0x106   : > { %v468_v42 = vadd.f32 (%p439_p5), %v467_v37, %v466_v39  ;;  %v471_v43 = vsel (%p439_p5), %vm461_vm2, %v450_v38, 0.0  ;;  %v458_v62 = vld [vmem:[#allocation2 + $0x68] sm:$0xff] (%p439_p5)  ;;  %v491_v8 = vsel (%p439_p5), %vm461_vm2, %v460_v4, 0.0 }
 0x107   : > { %v487_v3 = vsel (%p439_p5), %vm461_vm2, %v458_v62, 0.0 }
 0x108   : > { %v470_v45 = vadd.f32 %v469_v40, %v468_v42 }
 0x10a   : > { %v472_v48 = vadd.f32 %v471_v43, %v470_v45 }
 0x10c   : > { %v474_v51 = vadd.f32 %v473_v46, %v472_v48 }
 0x10e   : > { %v476_v54 = vadd.f32 %v475_v49, %v474_v51 }
 0x110   : > { %v478_v57 = vadd.f32 %v477_v52, %v476_v54 }
 0x112   : > { %v480_v60 = vadd.f32 %v479_v55, %v478_v57 }
 0x114   : > { %v482_v63 = vadd.f32 %v481_v58, %v480_v60 }
 0x116   : > { %v484_v2 = vadd.f32 %v483_v61, %v482_v63 }
 0x118   : > { %v486_v5 = vadd.f32 %v485_v0, %v484_v2 }
 0x11a   : > { %v488_v7 = vadd.f32 %v487_v3, %v486_v5 }
 0x11c   : > { %v490_v9 = vadd.f32 %v489_v6, %v488_v7 }
 0x11e   : > { %v492_v10 = vadd.f32 %v491_v8, %v490_v9 }
 0x120   : > { %v493_v11 = vrot.slane %v492_v10, 4 }
 0x122   : > { %v494_v12 = vadd.f32 %v493_v11, %v492_v10 }
 0x124   : > { %v495_v13 = vrot.slane %v494_v12, 2 }
 0x126   : > { %v496_v14 = vadd.f32 %v495_v13, %v494_v12 }
 0x128   : > { %v497_v15 = vrot.slane %v496_v14, 1 }
 0x12a   : > { %v498_v16 = vadd.f32 %v497_v15, %v496_v14 }
 0x12c   : > { %v1045_v17 = vmul.f32 0.0078125, %v498_v16 }
 0x12e   : > { %v501_v18 = vsub.f32 %v445_v28, %v1045_v17  ;;  %v502_v19 = vsub.f32 %v446_v29, %v1045_v17  ;;  %v503_v20 = vsub.f32 %v447_v30, %v1045_v17  ;;  %v504_v21 = vsub.f32 %v448_v31, %v1045_v17 }
 0x12f   : > { %v505_v22 = vsub.f32 %v449_v35, %v1045_v17  ;;  %v506_v26 = vsub.f32 %v450_v38, %v1045_v17  ;;  %v507_v32 = vsub.f32 %v451_v41, %v1045_v17  ;;  %v508_v31 = vsub.f32 %v452_v44, %v1045_v17 }
 0x130   : > { %v517_v23 = vmul.f32 %v501_v18, %v501_v18  ;;  %v518_v24 = vmul.f32 %v502_v19, %v502_v19  ;;  %v519_v25 = vmul.f32 %v503_v20, %v503_v20  ;;  %v520_v27 = vmul.f32 %v504_v21, %v504_v21 }
 0x131   : > { %v521_v33 = vmul.f32 %v505_v22, %v505_v22  ;;  %v522_v36 = vmul.f32 %v506_v26, %v506_v26  ;;  %v509_v39 = vsub.f32 %v453_v47, %v1045_v17  ;;  %v523_v38 = vmul.f32 %v507_v32, %v507_v32 }
 0x132   : > { %v533_v34 = vsel %vm461_vm2, %v517_v23, 0.0  ;;  %v534_v28 = vsel %vm461_vm2, %v518_v24, 0.0  ;;  %v536_v29 = vsel %vm461_vm2, %v519_v25, 0.0  ;;  %v538_v35 = vsel %vm461_vm2, %v520_v27, 0.0 }
 0x133   : > { %v535_v30 = vadd.f32 %v534_v28, %v533_v34  ;;  %v540_v40 = vsel %vm461_vm2, %v521_v33, 0.0  ;;  %v510_v42 = vsub.f32 %v454_v50, %v1045_v17  ;;  %v524_v43 = vmul.f32 %v508_v31, %v508_v31  ;;  %v577_v34 = vld [vmem:[%s1201_s2] sm:$0x1] }
 0x134   : > { %v542_v45 = vsel %vm461_vm2, %v522_v36, 0.0  ;;  %v511_v48 = vsub.f32 %v455_v53, %v1045_v17  ;;  %v525_v49 = vmul.f32 %v509_v39, %v509_v39  ;;  %v544_v44 = vsel %vm461_vm2, %v523_v38, 0.0 }
 0x135   : > { %v537_v37 = vadd.f32 %v536_v29, %v535_v30  ;;  %v512_v52 = vsub.f32 %v456_v56, %v1045_v17  ;;  %v526_v54 = vmul.f32 %v510_v42, %v510_v42  ;;  %v546_v47 = vsel %vm461_vm2, %v524_v43, 0.0  ;;  %v581_v30 = vld [vmem:[%s1201_s2 + $0x1] sm:$0x1] }
 0x136   : > { %v513_v57 = vsub.f32 %v457_v59, %v1045_v17  ;;  %v527_v58 = vmul.f32 %v511_v48, %v511_v48  ;;  %v548_v50 = vsel %vm461_vm2, %v525_v49, 0.0  ;;  %v514_v61 = vsub.f32 %v458_v62, %v1045_v17 }
 0x137   : > { %v539_v41 = vadd.f32 %v538_v35, %v537_v37  ;;  %v528_v63 = vmul.f32 %v512_v52, %v512_v52  ;;  %v550_v53 = vsel %vm461_vm2, %v526_v54, 0.0  ;;  %v515_v2 = vsub.f32 %v459_v1, %v1045_v17 }
 0x138   : > { %v529_v3 = vmul.f32 %v513_v57, %v513_v57  ;;  %v552_v56 = vsel %vm461_vm2, %v527_v58, 0.0  ;;  %v516_v6 = vsub.f32 %v460_v4, %v1045_v17  ;;  %v530_v7 = vmul.f32 %v514_v61, %v514_v61 }
 0x139   : > { %v541_v46 = vadd.f32 %v540_v40, %v539_v41  ;;  %v554_v59 = vsel %vm461_vm2, %v528_v63, 0.0  ;;  %v531_v9 = vmul.f32 %v515_v2, %v515_v2  ;;  %v570_v21 = vmul.f32 0.0, %v1045_v17 }
 0x13a   : > { %v556_v10 = vsel %vm461_vm2, %v529_v3, 0.0  ;;  %v532_v11 = vmul.f32 %v516_v6, %v516_v6  ;;  %v558_v12 = vsel %vm461_vm2, %v530_v7, 0.0 }
 0x13b   : > { %v543_v51 = vadd.f32 %v542_v45, %v541_v46  ;;  %v560_v1 = vsel %vm461_vm2, %v531_v9, 0.0  ;;  %v571_v24 = vmul.f32 %v570_v21, %v1045_v17 }
 0x13c   : > { %v562_v15 = vsel %vm461_vm2, %v532_v11, 0.0 }
 0x13d   : > { %v545_v55 = vadd.f32 %v544_v44, %v543_v51 }
 0x13f   : > { %v547_v60 = vadd.f32 %v546_v47, %v545_v55 }
 0x141   : > { %v549_v0 = vadd.f32 %v548_v50, %v547_v60 }
 0x143   : > { %v551_v5 = vadd.f32 %v550_v53, %v549_v0 }
 0x145   : > { %v553_v8 = vadd.f32 %v552_v56, %v551_v5 }
 0x147   : > { %v555_v62 = vadd.f32 %v554_v59, %v553_v8 }
 0x149   : > { %v557_v13 = vadd.f32 %v556_v10, %v555_v62 }
 0x14b   : > { %v559_v14 = vadd.f32 %v558_v12, %v557_v13 }
 0x14d   : > { %v561_v16 = vadd.f32 %v560_v1, %v559_v14 }
 0x14f   : > { %v563_v18 = vadd.f32 %v562_v15, %v561_v16 }
 0x151   : > { %v564_v4 = vrot.slane %v563_v18, 4 }
 0x153   : > { %v565_v19 = vadd.f32 %v564_v4, %v563_v18 }
 0x155   : > { %v566_v20 = vrot.slane %v565_v19, 2 }
 0x157   : > { %v567_v22 = vadd.f32 %v566_v20, %v565_v19 }
 0x159   : > { %v568_v23 = vrot.slane %v567_v22, 1 }
 0x15b   : > { %v569_v25 = vadd.f32 %v568_v23, %v567_v22 }
 0x15d   : > { %v572_v26 = vsub.f32 %v569_v25, %v571_v24 }
 0x15f   : > { %v573_v27 = vmul.f32 0.0078125, %v572_v26 }
 0x161   : > { %v574_v32 = vmax.f32 %v573_v27, 0.0 }
 0x163   : > { %v575_v33 = vadd.f32 1e-05, %v574_v32 }
 0x165   : > { %901 = vrsqrt.f32 %v575_v33 }
 0x16f   : > { %v902_v28 = vpop.eup %901 }
 0x170   : > { %v578_v29 = vmul.f32 %v902_v28, %v577_v34 }
 0x172   : > { %580 = vst.msk [vmem:[#allocation3] sm:$0x1] %vm579_vm3, %v578_v29  ;;  %v582_v31 = vmul.f32 %v578_v29, %v1045_v17 }
 0x174   : > { %v583_v36 = vsub.f32 %v581_v30, %v582_v31 }
 0x176   : > { %584 = vst.msk [vmem:[#allocation3 + $0x1] sm:$0x1] %vm579_vm3, %v583_v36 }
 0x177 PF: > { %p813_p6 = scmp.ne.s32.totalorder %s917_s12, 1 }
 0x178   : > { %v590_v35 = vld [vmem:[#allocation2] sm:$0xff] (!%p813_p6)  ;;  %v591_v40 = vld [vmem:[#allocation2 + $0x8] sm:$0xff] (!%p813_p6)  ;;  %v592_v41 = vld [vmem:[#allocation2 + $0x10] sm:$0xff] (!%p813_p6)  ;;  %vm696_vm4 = vcmask (!%p813_p6), 64512  }
 0x179   : > { %587 = sbr.rel (%p813_p6) target bundleno = 404 (0x194), region = 44  ;;  %v1089_v37 = vld [vmem:[#allocation3] ss:$0 sm:$0xff] (!%p813_p6)  ;;  %v593_v42 = vld [vmem:[#allocation2 + $0x18] sm:$0xff] (!%p813_p6)  ;;  %v595_v48 = vld [vmem:[#allocation2 + $0x28] sm:$0xff] (!%p813_p6) }
 0x17a   : > { %v611_v38 = vmul.f32 (!%p813_p6), %v1089_v37, %v590_v35  ;;  %v612_v43 = vmul.f32 (!%p813_p6), %v1089_v37, %v591_v40  ;;  %v613_v17 = vmul.f32 (!%p813_p6), %v1089_v37, %v592_v41  ;;  %v614_v45 = vmul.f32 (!%p813_p6), %v1089_v37, %v593_v42  ;;  %v594_v46 = vld [vmem:[#allocation2 + $0x20] sm:$0xff] (!%p813_p6)  ;;  %v596_v49 = vld [vmem:[#allocation2 + $0x30] sm:$0xff] (!%p813_p6)  ;;  %v597_v47 = vld [vmem:[#allocation2 + $0x38] sm:$0xff] (!%p813_p6) }
 0x17b   : > { %v615_v51 = vmul.f32 (!%p813_p6), %v1089_v37, %v594_v46  ;;  %v616_v52 = vmul.f32 (!%p813_p6), %v1089_v37, %v595_v48  ;;  %v617_v54 = vmul.f32 (!%p813_p6), %v1089_v37, %v596_v49  ;;  %v618_v50 = vmul.f32 (!%p813_p6), %v1089_v37, %v597_v47  ;;  %v598_v53 = vld [vmem:[#allocation2 + $0x40] sm:$0xff] (!%p813_p6)  ;;  %v599_v5 = vld [vmem:[#allocation2 + $0x48] sm:$0xff] (!%p813_p6)  ;;  %v600_v6 = vld [vmem:[#allocation2 + $0x50] sm:$0xff] (!%p813_p6) }
 0x17c   : > { %v619_v13 = vmul.f32 (!%p813_p6), %v1089_v37, %v598_v53  ;;  %v620_v1 = vmul.f32 (!%p813_p6), %v1089_v37, %v599_v5  ;;  %v621_v14 = vmul.f32 (!%p813_p6), %v1089_v37, %v600_v6  ;;  %v601_v15 = vld [vmem:[#allocation2 + $0x58] sm:$0xff] (!%p813_p6)  ;;  %v602_v16 = vld [vmem:[#allocation2 + $0x60] sm:$0xff] (!%p813_p6)  ;;  %v603_v18 = vld [vmem:[#allocation2 + $0x68] sm:$0xff] (!%p813_p6) }
 0x17d   : > { %v1091_v39 = vld [vmem:[#allocation3 + $0x1] ss:$0 sm:$0xff] (!%p813_p6)  ;;  %v622_v25 = vmul.f32 (!%p813_p6), %v1089_v37, %v601_v15  ;;  %v623_v26 = vmul.f32 (!%p813_p6), %v1089_v37, %v602_v16  ;;  %v624_v27 = vmul.f32 (!%p813_p6), %v1089_v37, %v603_v18  ;;  %v604_v32 = vld [vmem:[#allocation2 + $0x70] sm:$0xff] (!%p813_p6)  ;;  %v605_v40 = vld [vmem:[#allocation2 + $0x78] sm:$0xff] (!%p813_p6) }
 0x17e   : > { %v632_v44 = vadd.f32 (!%p813_p6), %v1091_v39, %v611_v38  ;;  %v633_v55 = vadd.f32 (!%p813_p6), %v1091_v39, %v612_v43  ;;  %v634_v57 = vadd.f32 (!%p813_p6), %v1091_v39, %v613_v17  ;;  %v635_v58 = vadd.f32 (!%p813_p6), %v1091_v39, %v614_v45 }
 0x17f   : > { %v636_v61 = vadd.f32 (!%p813_p6), %v1091_v39, %v615_v51  ;;  %v637_v63 = vadd.f32 (!%p813_p6), %v1091_v39, %v616_v52  ;;  %v638_v62 = vadd.f32 (!%p813_p6), %v1091_v39, %v617_v54  ;;  %v639_v11 = vadd.f32 (!%p813_p6), %v1091_v39, %v618_v50 }
 0x180   : > { %vm648_vm5 = vcmp.ge.f32.partialorder %v632_v44, 0.0  ;;  %v664_v60 = vmul.f32 0.2, %v632_v44  ;;  %vm649_vm6 = vcmp.ge.f32.partialorder %v633_v55, 0.0  ;;  %v665_v0 = vmul.f32 0.2, %v633_v55 }
 0x181   : > { %vm650_vm7 = vcmp.ge.f32.partialorder %v634_v57, 0.0  ;;  %v666_v2 = vmul.f32 0.2, %v634_v57  ;;  %vm651_vm8 = vcmp.ge.f32.partialorder %v635_v58, 0.0  ;;  %v667_v56 = vmul.f32 0.2, %v635_v58 }
 0x182   : > { %v680_v3 = vsel %vm648_vm5, %v632_v44, %v664_v60  ;;  %vm652_vm9 = vcmp.ge.f32.partialorder %v636_v61, 0.0  ;;  %v681_v7 = vsel %vm649_vm6, %v633_v55, %v665_v0  ;;  %v668_v8 = vmul.f32 0.2, %v636_v61 }
 0x183   : > { %697 = vst.msk [vmem:[%s1202_s3] sm:$0xff] %vm696_vm4, %v680_v3  ;;  %v682_v59 = vsel %vm650_vm7, %v634_v57, %v666_v2  ;;  %vm653_vm10 = vcmp.ge.f32.partialorder %v637_v63, 0.0  ;;  %698 = vst.msk [vmem:[%s1202_s3 + $0x8] sm:$0xff] %vm696_vm4, %v681_v7  ;;  %v683_v9 = vsel %vm651_vm8, %v635_v58, %v667_v56  ;;  %v669_v10 = vmul.f32 0.2, %v637_v63 }
 0x184   : > { %699 = vst.msk [vmem:[%s1202_s3 + $0x10] sm:$0xff] %vm696_vm4, %v682_v59  ;;  %700 = vst.msk [vmem:[%s1202_s3 + $0x18] sm:$0xff] %vm696_vm4, %v683_v9  ;;  %v684_v12 = vsel %vm652_vm9, %v636_v61, %v668_v8  ;;  %vm654_vm11 = vcmp.ge.f32.partialorder %v638_v62, 0.0  ;;  %v670_v19 = vmul.f32 0.2, %v638_v62  ;;  %vm655_vm12 = vcmp.ge.f32.partialorder %v639_v11, 0.0 }
 0x185   : > { %701 = vst.msk [vmem:[%s1202_s3 + $0x20] sm:$0xff] %vm696_vm4, %v684_v12  ;;  %v685_v4 = vsel %vm653_vm10, %v637_v63, %v669_v10  ;;  %v671_v20 = vmul.f32 0.2, %v639_v11  ;;  %v640_v21 = vadd.f32 %v1091_v39, %v619_v13  ;;  %v641_v22 = vadd.f32 %v1091_v39, %v620_v1 }
 0x186   : > { %702 = vst.msk [vmem:[%s1202_s3 + $0x28] sm:$0xff] %vm696_vm4, %v685_v4  ;;  %v642_v23 = vadd.f32 %v1091_v39, %v621_v14  ;;  %v686_v24 = vsel %vm654_vm11, %v638_v62, %v670_v19  ;;  %v643_v30 = vadd.f32 %v1091_v39, %v622_v25  ;;  %v644_v36 = vadd.f32 %v1091_v39, %v623_v26 }
 0x187   : > { %703 = vst.msk [vmem:[%s1202_s3 + $0x30] sm:$0xff] %vm696_vm4, %v686_v24  ;;  %v687_v33 = vsel %vm655_vm12, %v639_v11, %v671_v20  ;;  %vm656_vm13 = vcmp.ge.f32.partialorder %v640_v21, 0.0  ;;  %v672_v34 = vmul.f32 0.2, %v640_v21  ;;  %vm657_vm14 = vcmp.ge.f32.partialorder %v641_v22, 0.0 }
 0x188   : > { %704 = vst.msk [vmem:[%s1202_s3 + $0x38] sm:$0xff] %vm696_vm4, %v687_v33  ;;  %v673_v28 = vmul.f32 0.2, %v641_v22  ;;  %vm658_vm15 = vcmp.ge.f32.partialorder %v642_v23, 0.0  ;;  %v674_v29 = vmul.f32 0.2, %v642_v23  ;;  %v645_v35 = vadd.f32 %v1091_v39, %v624_v27 }
 0x189   : > { %v688_v31 = vsel %vm656_vm13, %v640_v21, %v672_v34  ;;  %v625_v38 = vmul.f32 %v1089_v37, %v604_v32  ;;  %vm659_vm0 = vcmp.ge.f32.partialorder %v643_v30, 0.0  ;;  %v675_v43 = vmul.f32 0.2, %v643_v30 }
 0x18a   : > { %705 = vst.msk [vmem:[%s1202_s3 + $0x40] sm:$0xff] %vm696_vm4, %v688_v31  ;;  %v689_v41 = vsel %vm657_vm14, %v641_v22, %v673_v28  ;;  %v690_v42 = vsel %vm658_vm15, %v642_v23, %v674_v29  ;;  %vm660_vm1 = vcmp.ge.f32.partialorder %v644_v36, 0.0  ;;  %v676_v17 = vmul.f32 0.2, %v644_v36 }
 0x18b   : > { %706 = vst.msk [vmem:[%s1202_s3 + $0x48] sm:$0xff] %vm696_vm4, %v689_v41  ;;  %707 = vst.msk [vmem:[%s1202_s3 + $0x50] sm:$0xff] %vm696_vm4, %v690_v42  ;;  %vm661_vm2 = vcmp.ge.f32.partialorder %v645_v35, 0.0  ;;  %v677_v45 = vmul.f32 0.2, %v645_v35  ;;  %v691_v46 = vsel %vm659_vm0, %v643_v30, %v675_v43  ;;  %v646_v48 = vadd.f32 %v1091_v39, %v625_v38 }
 0x18c   : > { %v626_v49 = vmul.f32 %v1089_v37, %v605_v40  ;;  %708 = vst.msk [vmem:[%s1202_s3 + $0x58] sm:$0xff] %vm696_vm4, %v691_v46  ;;  %v692_v44 = vsel %vm660_vm1, %v644_v36, %v676_v17 }
 0x18d   : > { %v693_v51 = vsel %vm661_vm2, %v645_v35, %v677_v45  ;;  %709 = vst.msk [vmem:[%s1202_s3 + $0x60] sm:$0xff] %vm696_vm4, %v692_v44  ;;  %vm662_vm3 = vcmp.ge.f32.partialorder %v646_v48, 0.0  ;;  %v678_v52 = vmul.f32 0.2, %v646_v48 }
 0x18e   : > { %710 = vst.msk [vmem:[%s1202_s3 + $0x68] sm:$0xff] %vm696_vm4, %v693_v51  ;;  %v647_v37 = vadd.f32 %v1091_v39, %v626_v49 }
 0x18f   : > { %v694_v54 = vsel %vm662_vm3, %v646_v48, %v678_v52 }
 0x190   : > { %vm663_vm5 = vcmp.ge.f32.partialorder %v647_v37, 0.0  ;;  %v679_v47 = vmul.f32 0.2, %v647_v37  ;;  %711 = vst.msk [vmem:[%s1202_s3 + $0x70] sm:$0xff] %vm696_vm4, %v694_v54 }
 0x192   : > { %v695_v55 = vsel %vm663_vm5, %v647_v37, %v679_v47 }
 0x193   : > { %712 = vst.msk [vmem:[%s1202_s3 + $0x78] sm:$0xff] %vm696_vm4, %v695_v55 }
 0x194 PF: > { %s13_s14 = sadd.s32 1, %s925_s14   ;;  %s1203_s12 = smov %s921_s13 }
 0x195   : > { %p10_p7 = scmp.ge.s32.totalorder %s13_s14, 4   ;;  %s1204_s13 = smov %s1206_s15 }
 0x197   :  { %12 = sbr.rel (!%p10_p7) target bundleno = 2 (0x2), region = 76 }

</bundles_post_ra>
